<compile_context>
chip_gen: v7x
topology: tpu7x:2x2x1
jax: 0.10.0
libtpu: 0.0.40
codegen_flags: <defaults>
</compile_context>

<pallas_src>
import functools

import jax
import jax.numpy as jnp
from jax.experimental import pallas as pl
from jax.experimental.pallas import tpu as pltpu


def _round_up(x: int, m: int) -> int:
    return ((x + m - 1) // m) * m


def _select_batch_tile(B: int, max_tile: int = 256) -> int:
    """Batch tile: multiple of 16 (bf16 sublane packing), capped at `max_tile`.

    For mid-size batches, pick ~B/2 so the grid has >= 2 tiles and both v7x
    TensorCores get work under dimension_semantics=("parallel",). On v5e/v6e
    the extra tile is harmless (sequential grid)."""
    b16 = _round_up(max(B, 1), 16)
    if b16 <= 16:
        return 16
    half = _round_up((b16 + 1) // 2, 16)
    return min(half, max_tile)


def _head_kernel(cls_ref, w1_ref, b1_ref, w2_ref, b2_ref, out_ref):
    """Fused MLP head: logits = relu(cls @ W1 + b1) @ W2 + b2.

    cls_ref : [TB, D]   bf16     w1_ref : [D, H_p]  bf16   b1_ref : [1, H_p] f32
    w2_ref  : [H_p, C_p] bf16    b2_ref : [1, C_p]  f32    out_ref: [TB, C_p] f32
    Dropout is a no-op at inference time, so it is intentionally omitted.
    Matmuls run on the MXU in bf16 with f32 accumulation; the bias-add / ReLU
    epilogue stays in f32.
    """
    h = jnp.dot(cls_ref[...], w1_ref[...],
                preferred_element_type=jnp.float32)          # [TB, H_p] f32
    h = jnp.maximum(h + b1_ref[...], 0.0)                    # f32 epilogue
    logits = jnp.dot(h.astype(w2_ref.dtype), w2_ref[...],
                     preferred_element_type=jnp.float32)     # [TB, C_p] f32
    out_ref[...] = (logits + b2_ref[...]).astype(out_ref.dtype)


def prepare_head_params(w1, b1, w2, b2):
    """One-time weight prep (hoisted out of the per-call hot path).

    Pads the H / C lane dims to multiples of 128 (zero padding keeps the math
    exact), casts matmul operands to bf16, keeps biases f32 for the f32
    epilogue. Call once and cache the result; only activations move per call.
    """
    D, H = w1.shape
    C = w2.shape[1]
    H_p = _round_up(H, 128)
    C_p = _round_up(C, 128)

    w1_p = jnp.zeros((D, H_p), jnp.bfloat16).at[:, :H].set(w1.astype(jnp.bfloat16))
    b1_p = jnp.zeros((1, H_p), jnp.float32).at[:, :H].set(
        b1.reshape(1, H).astype(jnp.float32))
    w2_p = jnp.zeros((H_p, C_p), jnp.bfloat16).at[:H, :C].set(w2.astype(jnp.bfloat16))
    b2_p = jnp.zeros((1, C_p), jnp.float32).at[:, :C].set(
        b2.reshape(1, C).astype(jnp.float32))
    return {"w1": w1_p, "b1": b1_p, "w2": w2_p, "b2": b2_p}


def mlp_head(cls_emb, head, *, num_labels, batch_tile=256):
    """cls_emb: [B, D]; head: prepared (padded bf16) params -> logits [B, num_labels] f32."""
    B, D = cls_emb.shape
    w1, b1, w2, b2 = head["w1"], head["b1"], head["w2"], head["b2"]
    H_p = w1.shape[1]
    C_p = w2.shape[1]

    TB = _select_batch_tile(B, batch_tile)
    B_p = _round_up(B, TB)

    # bf16 matmul operand; no D padding, no full HBM copy. Only a small
    # batch-edge pad when B is not a multiple of the tile.
    cls_bf = cls_emb.astype(jnp.bfloat16)
    if B_p != B:
        cls_bf = jnp.zeros((B_p, D), jnp.bfloat16).at[:B, :].set(cls_bf)

    cost = pl.CostEstimate(
        flops=2 * B_p * D * H_p + 2 * B_p * H_p * C_p,
        transcendentals=0,
        bytes_accessed=(B_p * D * 2            # cls (bf16)
                        + D * H_p * 2          # W1 (bf16)
                        + H_p * C_p * 2        # W2 (bf16)
                        + (H_p + C_p) * 4      # biases (f32)
                        + B_p * C_p * 4),      # logits out (f32)
    )

    out = pl.pallas_call(
        _head_kernel,
        out_shape=jax.ShapeDtypeStruct((B_p, C_p), jnp.float32),
        grid=(B_p // TB,),
        in_specs=[
            pl.BlockSpec((TB, D), lambda i: (i, 0)),      # cls tile, pipelined over B
            pl.BlockSpec((D, H_p), lambda i: (0, 0)),     # W1: VMEM-resident
            pl.BlockSpec((1, H_p), lambda i: (0, 0)),     # b1
            pl.BlockSpec((H_p, C_p), lambda i: (0, 0)),   # W2: VMEM-resident
            pl.BlockSpec((1, C_p), lambda i: (0, 0)),     # b2
        ],
        out_specs=pl.BlockSpec((TB, C_p), lambda i: (i, 0)),
        compiler_params=pltpu.CompilerParams(
            dimension_semantics=("parallel",),  # B tiles shard across TCs on v7x
        ),
        cost_estimate=cost,
    )(cls_bf, w1, b1, w2, b2)

    return out[:B, :num_labels]


@functools.partial(jax.jit, static_argnames=("num_labels", "batch_tile"))
def esmc_for_sequence_classification(tokens, embed_table, head,
                                     *, num_labels, batch_tile=256):
    """Full forward: backbone stand-in (CLS-row gather) + Pallas MLP head."""
    # --- backbone stand-in: gather ONLY the CLS row (sequence position 0) ---
    # Equivalent to outs.embeddings[:, 0, :] without materializing [B, L, D].
    # Table is stored in bf16, so no extra cast/copy of cls happens per call.
    cls = jnp.take(embed_table, tokens[:, 0], axis=0)          # [B, D] bf16
    # --- classification head (Pallas kernel) --------------------------------
    return mlp_head(cls, head, num_labels=num_labels, batch_tile=batch_tile)


def init_params(key, vocab_size, d_model, num_labels):
    """Mirrors the module's _init_weights: Linear weights ~ trunc_normal(std=0.02),
    biases zero. Embedding table is a deterministic backbone stand-in (bf16)."""
    h = d_model // 2
    k_emb, k_w1, k_w2 = jax.random.split(key, 3)

    def trunc_normal(k, shape, std=0.02):
        return std * jax.random.truncated_normal(k, -2.0, 2.0, shape, jnp.float32)

    return {
        "embed_table": (0.02 * jax.random.normal(
            k_emb, (vocab_size, d_model), jnp.float32)).astype(jnp.bfloat16),
        "w1": trunc_normal(k_w1, (d_model, h)),
        "b1": jnp.zeros((1, h), jnp.float32),
        "w2": trunc_normal(k_w2, (h, num_labels)),
        "b2": jnp.zeros((1, num_labels), jnp.float32),
    }


if __name__ == "__main__":
    # Small, module-consistent shapes.
    B, L = 2, 8           # batch of token sequences [B, L]
    VOCAB = 64            # synthetic vocab
    D_MODEL = 32          # stand-in for esmc embed.embedding_dim
    NUM_LABELS = 2

    key = jax.random.PRNGKey(0)
    k_tok, k_par = jax.random.split(key)

    tokens = jax.random.randint(k_tok, (B, L), 0, VOCAB, dtype=jnp.int32)
    params = init_params(k_par, VOCAB, D_MODEL, NUM_LABELS)

    # One-time weight prep (outside the per-call path).
    head = prepare_head_params(params["w1"], params["b1"], params["w2"], params["b2"])
    head = jax.tree_util.tree_map(jax.block_until_ready, head)

    logits = esmc_for_sequence_classification(
        tokens, params["embed_table"], head, num_labels=NUM_LABELS)
    logits = jax.block_until_ready(logits)
    assert logits.shape == (B, NUM_LABELS)

    # Reference 1: mirror the kernel's exact precision pipeline (bf16 operands,
    # f32 accumulation / epilogue) in plain JAX.
    cls_bf = jnp.take(params["embed_table"], tokens[:, 0], axis=0)   # bf16
    h_ref = jnp.maximum(
        jnp.dot(cls_bf, params["w1"].astype(jnp.bfloat16),
                preferred_element_type=jnp.float32) + params["b1"], 0.0)
    logits_ref_bf16 = (jnp.dot(h_ref.astype(jnp.bfloat16),
                               params["w2"].astype(jnp.bfloat16),
                               preferred_element_type=jnp.float32) + params["b2"])
    assert jnp.allclose(logits, logits_ref_bf16, atol=1e-4, rtol=1e-4)

    # Reference 2: pure f32 math (loose tolerance for bf16 operand rounding).
    cls_f32 = cls_bf.astype(jnp.float32)
    h_f32 = jnp.maximum(cls_f32 @ params["w1"] + params["b1"], 0.0)
    logits_ref_f32 = h_f32 @ params["w2"] + params["b2"]
    assert jnp.allclose(logits, logits_ref_f32, atol=1e-2, rtol=1e-2)

    print("KERNEL_OK")
</pallas_src>

<mosaic_0001>
module attributes {stable_mosaic.version = 11 : i64} {
  func.func @_head_kernel(%arg0: i32, %arg1: memref<16x32xbf16, #tpu.memory_space<vmem>>, %arg2: memref<32x128xbf16, #tpu.memory_space<vmem>>, %arg3: memref<1x128xf32, #tpu.memory_space<vmem>>, %arg4: memref<128x128xbf16, #tpu.memory_space<vmem>>, %arg5: memref<1x128xf32, #tpu.memory_space<vmem>>, %arg6: memref<16x128xf32, #tpu.memory_space<vmem>>) attributes {dimension_semantics = [#tpu.dimension_semantics<parallel>], iteration_bounds = array<i64: 1>, scalar_prefetch = 0 : i64, scratch_operands = 0 : i64, tpu.core_type = #tpu.core_type<tc>, window_params = [{transform_indices = @transform_0, window_bounds = array<i64: 16, 32>}, {pipeline_mode = #tpu.pipeline_mode<synchronous>, transform_indices = @transform_1, window_bounds = array<i64: 32, 128>}, {pipeline_mode = #tpu.pipeline_mode<synchronous>, transform_indices = @transform_2, window_bounds = array<i64: 1, 128>}, {pipeline_mode = #tpu.pipeline_mode<synchronous>, transform_indices = @transform_3, window_bounds = array<i64: 128, 128>}, {pipeline_mode = #tpu.pipeline_mode<synchronous>, transform_indices = @transform_4, window_bounds = array<i64: 1, 128>}, {transform_indices = @transform_5, window_bounds = array<i64: 16, 128>}]} {
    %c0 = arith.constant 0 : index
    %c0_0 = arith.constant 0 : index
    %0 = vector.load %arg1[%c0, %c0_0] : memref<16x32xbf16, #tpu.memory_space<vmem>>, vector<16x32xbf16>
    %c0_1 = arith.constant 0 : index
    %c0_2 = arith.constant 0 : index
    %1 = vector.load %arg2[%c0_1, %c0_2] : memref<32x128xbf16, #tpu.memory_space<vmem>>, vector<32x128xbf16>
    %cst = arith.constant dense<0.000000e+00> : vector<16x128xf32>
    %2 = tpu.matmul %0, %1, %cst {dimension_numbers = #tpu.dot_dimension_numbers<[1], [0], [0], [1], [0, 0, 1, 1], [], []>} : vector<16x32xbf16>, vector<32x128xbf16>, vector<16x128xf32> -> vector<16x128xf32>
    %c0_3 = arith.constant 0 : index
    %c0_4 = arith.constant 0 : index
    %3 = vector.load %arg3[%c0_3, %c0_4] : memref<1x128xf32, #tpu.memory_space<vmem>>, vector<1x128xf32>
    %4 = vector.broadcast %3 : vector<1x128xf32> to vector<16x128xf32>
    %5 = arith.addf %2, %4 : vector<16x128xf32>
    %cst_5 = arith.constant 0.000000e+00 : f32
    %6 = vector.broadcast %cst_5 : f32 to vector<16x128xf32>
    %7 = arith.maximumf %5, %6 : vector<16x128xf32>
    %8 = arith.truncf %7 : vector<16x128xf32> to vector<16x128xbf16>
    %c0_6 = arith.constant 0 : index
    %c0_7 = arith.constant 0 : index
    %9 = vector.load %arg4[%c0_6, %c0_7] : memref<128x128xbf16, #tpu.memory_space<vmem>>, vector<128x128xbf16>
    %cst_8 = arith.constant dense<0.000000e+00> : vector<16x128xf32>
    %10 = tpu.matmul %8, %9, %cst_8 {dimension_numbers = #tpu.dot_dimension_numbers<[1], [0], [0], [1], [0, 0, 1, 1], [], []>} : vector<16x128xbf16>, vector<128x128xbf16>, vector<16x128xf32> -> vector<16x128xf32>
    %c0_9 = arith.constant 0 : index
    %c0_10 = arith.constant 0 : index
    %11 = vector.load %arg5[%c0_9, %c0_10] : memref<1x128xf32, #tpu.memory_space<vmem>>, vector<1x128xf32>
    %12 = vector.broadcast %11 : vector<1x128xf32> to vector<16x128xf32>
    %13 = arith.addf %10, %12 : vector<16x128xf32>
    %c0_11 = arith.constant 0 : index
    %c0_12 = arith.constant 0 : index
    %14 = vector.load %arg6[%c0_11, %c0_12] : memref<16x128xf32, #tpu.memory_space<vmem>>, vector<16x128xf32>
    tpu.vector_store %arg6[%c0_11, %c0_12], %13 {strides = array<i32>} : memref<16x128xf32, #tpu.memory_space<vmem>>, vector<16x128xf32>,
    return
  }
  func.func @transform_0(%arg0: i32) -> (i32, i32) {
    %c0_i32 = arith.constant 0 : i32
    %c0_i32_0 = arith.constant 0 : i32
    return %arg0, %c0_i32 : i32, i32
  }
  func.func @transform_1(%arg0: i32) -> (i32, i32) {
    %c0_i32 = arith.constant 0 : i32
    %c0_i32_0 = arith.constant 0 : i32
    %c0_i32_1 = arith.constant 0 : i32
    return %c0_i32, %c0_i32_0 : i32, i32
  }
  func.func @transform_2(%arg0: i32) -> (i32, i32) {
    %c0_i32 = arith.constant 0 : i32
    %c0_i32_0 = arith.constant 0 : i32
    %c0_i32_1 = arith.constant 0 : i32
    return %c0_i32, %c0_i32_0 : i32, i32
  }
  func.func @transform_3(%arg0: i32) -> (i32, i32) {
    %c0_i32 = arith.constant 0 : i32
    %c0_i32_0 = arith.constant 0 : i32
    %c0_i32_1 = arith.constant 0 : i32
    return %c0_i32, %c0_i32_0 : i32, i32
  }
  func.func @transform_4(%arg0: i32) -> (i32, i32) {
    %c0_i32 = arith.constant 0 : i32
    %c0_i32_0 = arith.constant 0 : i32
    %c0_i32_1 = arith.constant 0 : i32
    return %c0_i32, %c0_i32_0 : i32, i32
  }
  func.func @transform_5(%arg0: i32) -> (i32, i32) {
    %c0_i32 = arith.constant 0 : i32
    %c0_i32_0 = arith.constant 0 : i32
    return %arg0, %c0_i32 : i32, i32
  }
}

</mosaic_0001>

<bundles_post_ra>
// kernel: esmc_for_sequence_classification.1
= control target key start
LH: loop header
LB: loop body
LE: loop exit
PB: predicated region body
PF: predicated region fallthrough
CT: control target
= control target key end

     0   :  { %v284_v0 = vmov 0.0   ;;  %vm285_vm0 = vmmov 0   ;;  %vm51_vm1 = vcmask 261120   ;;  %s361_s1 = inlined_call_operand.vmem [shape: bf16[32,128], index: 1, kind: input, shape index: {}]   ;;  %s362_s3 = inlined_call_operand.vmem [shape: bf16[128,128], index: 3, kind: input, shape index: {}]   ;;  %s363_s0 = inlined_call_operand.vmem [shape: bf16[16,32], index: 0, kind: input, shape index: {}]   ;;  %s364_s2 = inlined_call_operand.vmem [shape: f32[1,128], index: 2, kind: input, shape index: {}]   ;;  %s365_s4 = inlined_call_operand.vmem [shape: f32[1,128], index: 4, kind: input, shape index: {}]   ;;  %s366_s5 = inlined_call_operand.vmem [shape: f32[16,128], index: 5, kind: output, shape index: {}]  }
   0x1   :  { %243 = vmatprep.subr.bf16.mxu0 %v284_v0  ;;  %v273_v1 = vld [vmem:[%s361_s1] sm:$0xff]   ;;  %247 = vmatprep.mubr.msk.bf16.mxu0 %vm285_vm0, %v284_v0  ;;  %v274_v2 = vld [vmem:[%s361_s1 + $0x8] sm:$0xff]   ;;  %v278_v6 = vld [vmem:[%s362_s3 + $0x10] sm:$0xff]  }
   0x2   :  { %251 = vmatprep.subr.bf16.mxu1 %v284_v0  ;;  %267 = vmatprep.mubr.msk.bf16.mxu1 %vm285_vm0, %v284_v0  ;;  %v276_v3 = vld [vmem:[%s362_s3] sm:$0xff]   ;;  %v277_v5 = vld [vmem:[%s362_s3 + $0x8] sm:$0xff]   ;;  %v279_v7 = vld [vmem:[%s362_s3 + $0x18] sm:$0xff]  }
   0x3   :  { %244 = vmatpush3.bf16.msra.mxu0 %v273_v1  ;;  %v275_v4 = vld [vmem:[%s363_s0] sm:$0xff]   ;;  %252 = vmatpush3.bf16.msra.mxu1 %v276_v3  ;;  %v281_v9 = vld [vmem:[%s362_s3 + $0x28] sm:$0xff]   ;;  %v282_v10 = vld [vmem:[%s362_s3 + $0x30] sm:$0xff]  }
   0x4   :  { %245 = vmatprep.subr.bf16.mxu0 %v284_v0  ;;  %253 = vmatprep.subr.bf16.mxu1 %v284_v0  ;;  %v280_v8 = vld [vmem:[%s362_s3 + $0x20] sm:$0xff]   ;;  %v283_v11 = vld [vmem:[%s362_s3 + $0x38] sm:$0xff]  }
   0x5   :  { %v217_v12 = vld [vmem:[%s364_s2] ss:$0 sm:$0xff] }
   0x6   :  { %v222_v22 = vld [vmem:[%s365_s4] ss:$0 sm:$0xff] }
   0x7   :  { %246 = vmatpush3.bf16.msra.mxu0 %v274_v2  ;;  %254 = vmatpush3.bf16.msra.mxu1 %v277_v5 }
   0x8   :  { %255 = vmatprep.subr.bf16.mxu1 %v284_v0 }
   0xa   :  { %248 = vmatmul.mubr.msk.bf16.vlgmr.msra.gmra.mrb[0].mxu0 %vm51_vm1, %v275_v4 }
   0xb   :  { %256 = vmatpush3.bf16.msra.mxu1 %v278_v6 }
   0xc   :  { %257 = vmatprep.subr.bf16.mxu1 %v284_v0 }
   0xf   :  { %258 = vmatpush3.bf16.msra.mxu1 %v279_v7 }
  0x10   :  { %259 = vmatprep.subr.bf16.mxu1 %v284_v0 }
  0x13   :  { %260 = vmatpush3.bf16.msra.mxu1 %v280_v8 }
  0x14   :  { %261 = vmatprep.subr.bf16.mxu1 %v284_v0 }
  0x17   :  { %262 = vmatpush3.bf16.msra.mxu1 %v281_v9 }
  0x18   :  { %263 = vmatprep.subr.bf16.mxu1 %v284_v0 }
  0x1b   :  { %264 = vmatpush3.bf16.msra.mxu1 %v282_v10 }
  0x1c   :  { %265 = vmatprep.subr.bf16.mxu1 %v284_v0 }
  0x1f   :  { %266 = vmatpush3.bf16.msra.mxu1 %v283_v11 }
  0xdd   :  { %v89_v13 = vpop.f32.mrb[0].mxu0 }
  0xde   :  { %v90_v14 = vadd.f32 %v217_v12, %v89_v13  ;;  %v249_v15 = vpop.f32.mrb[1].mxu0 }
  0xdf   :  { %v92_v16 = vpop.f32.mrb[2].mxu0 }
  0xe0   :  { %v93_v17 = vadd.f32 %v217_v12, %v92_v16  ;;  %v250_v18 = vpop.f32.mrb[3].mxu0  ;;  %v96_v19 = vmax.f32 %v90_v14, 0.0 }
  0xe2   :  { %v97_v20 = vmax.f32 %v93_v17, 0.0 }
  0xe4   :  { %v98_v21 = vpack.c.bf16 %v97_v20, %v96_v19 }
  0xe6   :  { %268 = vmatmul.mubr.bf16.vlgmr.msra.gmra.mrb[0].mxu1 %v98_v21 }
 0x1b9   :  { %v204_v23 = vpop.f32.mrb[0].mxu1 }
 0x1ba   :  { %v205_v24 = vadd.f32 %v222_v22, %v204_v23  ;;  %v269_v25 = vpop.f32.mrb[1].mxu1 }
 0x1bb   :  { %v207_v26 = vpop.f32.mrb[2].mxu1 }
 0x1bc   :  { %211 = vst [vmem:[%s366_s5] sm:$0xff] %v205_v24  ;;  %v208_v27 = vadd.f32 %v222_v22, %v207_v26  ;;  %v270_v28 = vpop.f32.mrb[3].mxu1 }
 0x1be   :  { %212 = vst [vmem:[%s366_s5 + $0x8] sm:$0xff] %v208_v27 }

</bundles_post_ra>
